<compile_context>
chip_gen: v6e
topology: v6e:2x2x1
jax: 0.10.0
libtpu: 0.0.40
codegen_flags: <defaults>
</compile_context>

<pallas_src>
import jax
import jax.numpy as jnp
import numpy as np
from jax.experimental import pallas as pl
from jax.experimental.pallas import tpu as pltpu

C_OUT = 2      # occ_estimate channels (occupied / explored)


def _round_up(x, m):
    return ((x + m - 1) // m) * m


def _pick_tile(HW, max_tile, B):
    """Largest lane tile (multiple of 128) that divides HW, capped at max_tile.

    Falls back to a padded single/multi tile when HW is not a multiple of 128.
    Keeps >= 2 total grid steps when B == 1 (v7x megacore sharding).
    """
    max_tile = max(128, (max_tile // 128) * 128)
    if HW % 128 == 0:
        d = HW // 128
        kmax = min(d, max_tile // 128)
        if B == 1 and d >= 2:
            kmax = max(1, min(kmax, d // 2))
        for k in range(kmax, 0, -1):
            if d % k == 0:
                return 128 * k, HW
    tile = min(max_tile, _round_up(HW, 128))
    return tile, _round_up(HW, tile)


def mapper_kernel(w_ref, rgb_ref, ego_ref, occ_ref):
    # rgb_ref block: (1, 3, TILE), ego_ref block: (1, 2, TILE)
    # w_ref (SMEM, 12 scalars): per output channel [wr0, wr1, wr2, we0, we1, b]
    # (image normalization already folded into wr*/b in the wrapper).
    r = rgb_ref[0, 0:1, :]
    g = rgb_ref[0, 1:2, :]
    b = rgb_ref[0, 2:3, :]
    e0 = ego_ref[0, 0:1, :]
    e1 = ego_ref[0, 1:2, :]
    for c in range(C_OUT):                       # 10 VPU FMAs total — not the bottleneck
        o = 6 * c
        acc = (w_ref[o + 0] * r + w_ref[o + 1] * g + w_ref[o + 2] * b
               + w_ref[o + 3] * e0 + w_ref[o + 4] * e1 + w_ref[o + 5])
        occ_ref[0, c:c + 1, :] = jax.nn.sigmoid(acc)      # 'occ_estimate'


def mapper_forward(rgb_at_t, ego_map_gt_at_t, params, hw_tile=65536):
    """rgb_at_t: (B,H,W,3) float32 in [0,255];  ego_map_gt_at_t: (B,H,W,2)."""
    B, H, W, _ = rgb_at_t.shape
    HW = H * W

    # --- fold process_image (x/255, -mean, /std) into the 1x1-conv weights ---
    inv_255std = 1.0 / (255.0 * params['img_std'])                      # (3,)
    w_rgb_f = params['w_rgb'] * inv_255std[None, :]                     # (2,3)
    b_f = params['bias'] - params['w_rgb'] @ (params['img_mean'] / params['img_std'])
    w_flat = jnp.concatenate(
        [jnp.concatenate([w_rgb_f[c], params['w_ego'][c], b_f[c:c + 1]])
         for c in range(C_OUT)]).astype(jnp.float32)                    # (12,)

    # --- single NHWC->NCHW relayout per tensor; ego buffer is reused both as
    #     kernel input and as 'register_ego_map' (no second transpose) ---
    rgb_flat = jnp.transpose(rgb_at_t.astype(jnp.float32),
                             (0, 3, 1, 2)).reshape(B, 3, HW)            # (B,3,HW)
    ego_nchw = jnp.transpose(ego_map_gt_at_t.astype(jnp.float32),
                             (0, 3, 1, 2))                              # (B,2,H,W)
    ego_flat = ego_nchw.reshape(B, 2, HW)                               # (B,2,HW)

    tile, hw_pad = _pick_tile(HW, hw_tile, B)
    if hw_pad != HW:                       # only when HW is not a multiple of 128
        rgb_flat = jnp.pad(rgb_flat, ((0, 0), (0, 0), (0, hw_pad - HW)))
        ego_flat = jnp.pad(ego_flat, ((0, 0), (0, 0), (0, hw_pad - HW)))
    n_t = hw_pad // tile

    occ = pl.pallas_call(
        mapper_kernel,
        out_shape=jax.ShapeDtypeStruct((B, C_OUT, hw_pad), jnp.float32),
        grid=(B, n_t),
        in_specs=[
            pl.BlockSpec(memory_space=pltpu.MemorySpace.SMEM),          # 12 folded scalars
            pl.BlockSpec((1, 3, tile), lambda b, t: (b, 0, t)),         # rgb NCHW-flat
            pl.BlockSpec((1, 2, tile), lambda b, t: (b, 0, t)),         # ego NCHW-flat
        ],
        out_specs=pl.BlockSpec((1, C_OUT, tile), lambda b, t: (b, 0, t)),
        compiler_params=pltpu.CompilerParams(
            dimension_semantics=("parallel", "parallel")),
    )(w_flat, rgb_flat, ego_flat)

    if hw_pad != HW:
        pt = occ[:, :, :HW].reshape(B, C_OUT, H, W)
    else:
        pt = occ.reshape(B, C_OUT, H, W)                                # free bitcast

    # register_ego_map: passthrough of the (already materialized) NCHW ego map.
    return {'pt': pt, 'register_ego_map': ego_nchw}


def mapper_reference(rgb_at_t, ego_map_gt_at_t, params):
    """Plain-JAX reference mirroring the PyTorch semantics (un-folded math)."""
    rgb = jnp.transpose(rgb_at_t, (0, 3, 1, 2)) / 255.0                 # NCHW
    st = (rgb - params['img_mean'].reshape(1, 3, 1, 1)) / params['img_std'].reshape(1, 3, 1, 1)
    ego = jnp.transpose(ego_map_gt_at_t, (0, 3, 1, 2))                  # NCHW
    occ = (jnp.einsum('oc,bchw->bohw', params['w_rgb'], st)
           + jnp.einsum('oc,bchw->bohw', params['w_ego'], ego)
           + params['bias'].reshape(1, C_OUT, 1, 1))
    return {'pt': jax.nn.sigmoid(occ), 'register_ego_map': ego}


if __name__ == "__main__":
    key = jax.random.PRNGKey(0)
    k_rgb, k_ego, k_wr, k_we = jax.random.split(key, 4)

    B, H, W = 2, 16, 16
    rgb_at_t = jax.random.uniform(k_rgb, (B, H, W, 3), jnp.float32, 0.0, 255.0)
    ego_map_gt_at_t = jax.random.uniform(k_ego, (B, H, W, 2), jnp.float32, 0.0, 1.0)

    params = {
        'img_mean': jnp.array([0.485, 0.456, 0.406], jnp.float32),
        'img_std': jnp.array([0.229, 0.224, 0.225], jnp.float32),
        'w_rgb': 0.1 * jax.random.normal(k_wr, (C_OUT, 3), jnp.float32),
        'w_ego': 0.1 * jax.random.normal(k_we, (C_OUT, 2), jnp.float32),
        'bias': jnp.zeros((C_OUT,), jnp.float32),
    }

    ref = mapper_reference(rgb_at_t, ego_map_gt_at_t, params)

    # default path: tile == HW (256), no padding, grid=(B, 1)
    out = mapper_forward(rgb_at_t, ego_map_gt_at_t, params)
    jax.block_until_ready(out)
    np.testing.assert_allclose(np.asarray(out['pt']), np.asarray(ref['pt']),
                               rtol=1e-5, atol=1e-5)
    np.testing.assert_allclose(np.asarray(out['register_ego_map']),
                               np.asarray(ref['register_ego_map']),
                               rtol=1e-5, atol=1e-5)

    # multi-tile spatial grid path (HW=256 -> 2 tiles of 128)
    out2 = mapper_forward(rgb_at_t, ego_map_gt_at_t, params, hw_tile=128)
    jax.block_until_ready(out2)
    np.testing.assert_allclose(np.asarray(out2['pt']), np.asarray(ref['pt']),
                               rtol=1e-5, atol=1e-5)

    # non-multiple-of-128 HW exercises the padded-tail path (HW=120 -> pad to 128)
    H2, W2 = 10, 12
    rgb2 = jax.random.uniform(k_rgb, (B, H2, W2, 3), jnp.float32, 0.0, 255.0)
    ego2 = jax.random.uniform(k_ego, (B, H2, W2, 2), jnp.float32, 0.0, 1.0)
    ref2 = mapper_reference(rgb2, ego2, params)
    out3 = mapper_forward(rgb2, ego2, params)
    jax.block_until_ready(out3)
    np.testing.assert_allclose(np.asarray(out3['pt']), np.asarray(ref2['pt']),
                               rtol=1e-5, atol=1e-5)
    np.testing.assert_allclose(np.asarray(out3['register_ego_map']),
                               np.asarray(ref2['register_ego_map']),
                               rtol=1e-5, atol=1e-5)

    print("KERNEL_OK")
</pallas_src>

<mosaic_0001>
module attributes {stable_mosaic.version = 11 : i64} {
  func.func @mapper_kernel(%arg0: i32, %arg1: i32, %arg2: memref<12xf32, #tpu.memory_space<smem>>, %arg3: memref<1x3x256xf32, #tpu.memory_space<vmem>>, %arg4: memref<1x2x256xf32, #tpu.memory_space<vmem>>, %arg5: memref<1x2x256xf32, #tpu.memory_space<vmem>>) attributes {dimension_semantics = [#tpu.dimension_semantics<parallel>, #tpu.dimension_semantics<parallel>], iteration_bounds = array<i64: 2, 1>, scalar_prefetch = 0 : i64, scratch_operands = 0 : i64, tpu.core_type = #tpu.core_type<tc>, window_params = [{transform_indices = @transform_0, window_bounds = array<i64: 12>}, {transform_indices = @transform_1, window_bounds = array<i64: 1, 3, 256>}, {transform_indices = @transform_2, window_bounds = array<i64: 1, 2, 256>}, {transform_indices = @transform_3, window_bounds = array<i64: 1, 2, 256>}]} {
    %c0 = arith.constant 0 : index
    %c0_0 = arith.constant 0 : index
    %c0_1 = arith.constant 0 : index
    %0 = vector.load %arg3[%c0, %c0_0, %c0_1] : memref<1x3x256xf32, #tpu.memory_space<vmem>>, vector<1x1x256xf32>
    %1 = vector.shape_cast %0 : vector<1x1x256xf32> to vector<1x256xf32>
    %c0_2 = arith.constant 0 : index
    %c1 = arith.constant 1 : index
    %c0_3 = arith.constant 0 : index
    %2 = vector.load %arg3[%c0_2, %c1, %c0_3] : memref<1x3x256xf32, #tpu.memory_space<vmem>>, vector<1x1x256xf32>
    %3 = vector.shape_cast %2 : vector<1x1x256xf32> to vector<1x256xf32>
    %c0_4 = arith.constant 0 : index
    %c2 = arith.constant 2 : index
    %c0_5 = arith.constant 0 : index
    %4 = vector.load %arg3[%c0_4, %c2, %c0_5] : memref<1x3x256xf32, #tpu.memory_space<vmem>>, vector<1x1x256xf32>
    %5 = vector.shape_cast %4 : vector<1x1x256xf32> to vector<1x256xf32>
    %c0_6 = arith.constant 0 : index
    %c0_7 = arith.constant 0 : index
    %c0_8 = arith.constant 0 : index
    %6 = vector.load %arg4[%c0_6, %c0_7, %c0_8] : memref<1x2x256xf32, #tpu.memory_space<vmem>>, vector<1x1x256xf32>
    %7 = vector.shape_cast %6 : vector<1x1x256xf32> to vector<1x256xf32>
    %c0_9 = arith.constant 0 : index
    %c1_10 = arith.constant 1 : index
    %c0_11 = arith.constant 0 : index
    %8 = vector.load %arg4[%c0_9, %c1_10, %c0_11] : memref<1x2x256xf32, #tpu.memory_space<vmem>>, vector<1x1x256xf32>
    %9 = vector.shape_cast %8 : vector<1x1x256xf32> to vector<1x256xf32>
    %c0_12 = arith.constant 0 : index
    %10 = memref.load %arg2[%c0_12] : memref<12xf32, #tpu.memory_space<smem>>
    %11 = vector.broadcast %10 : f32 to vector<1x256xf32>
    %12 = arith.mulf %11, %1 : vector<1x256xf32>
    %c1_13 = arith.constant 1 : index
    %13 = memref.load %arg2[%c1_13] : memref<12xf32, #tpu.memory_space<smem>>
    %14 = vector.broadcast %13 : f32 to vector<1x256xf32>
    %15 = arith.mulf %14, %3 : vector<1x256xf32>
    %16 = arith.addf %12, %15 : vector<1x256xf32>
    %c2_14 = arith.constant 2 : index
    %17 = memref.load %arg2[%c2_14] : memref<12xf32, #tpu.memory_space<smem>>
    %18 = vector.broadcast %17 : f32 to vector<1x256xf32>
    %19 = arith.mulf %18, %5 : vector<1x256xf32>
    %20 = arith.addf %16, %19 : vector<1x256xf32>
    %c3 = arith.constant 3 : index
    %21 = memref.load %arg2[%c3] : memref<12xf32, #tpu.memory_space<smem>>
    %22 = vector.broadcast %21 : f32 to vector<1x256xf32>
    %23 = arith.mulf %22, %7 : vector<1x256xf32>
    %24 = arith.addf %20, %23 : vector<1x256xf32>
    %c4 = arith.constant 4 : index
    %25 = memref.load %arg2[%c4] : memref<12xf32, #tpu.memory_space<smem>>
    %26 = vector.broadcast %25 : f32 to vector<1x256xf32>
    %27 = arith.mulf %26, %9 : vector<1x256xf32>
    %28 = arith.addf %24, %27 : vector<1x256xf32>
    %c5 = arith.constant 5 : index
    %29 = memref.load %arg2[%c5] : memref<12xf32, #tpu.memory_space<smem>>
    %30 = vector.broadcast %29 : f32 to vector<1x256xf32>
    %31 = arith.addf %28, %30 : vector<1x256xf32>
    %32 = arith.negf %31 : vector<1x256xf32>
    %33 = math.exp %32 : vector<1x256xf32>
    %cst = arith.constant 1.000000e+00 : f32
    %34 = vector.broadcast %cst : f32 to vector<1x256xf32>
    %35 = arith.addf %34, %33 : vector<1x256xf32>
    %36 = arith.divf %34, %35 : vector<1x256xf32>
    %c0_15 = arith.constant 0 : index
    %c0_16 = arith.constant 0 : index
    %c0_17 = arith.constant 0 : index
    %37 = vector.load %arg5[%c0_15, %c0_16, %c0_17] : memref<1x2x256xf32, #tpu.memory_space<vmem>>, vector<1x1x256xf32>
    %38 = vector.shape_cast %37 : vector<1x1x256xf32> to vector<1x256xf32>
    %39 = vector.shape_cast %36 : vector<1x256xf32> to vector<1x1x256xf32>
    tpu.vector_store %arg5[%c0_15, %c0_16, %c0_17], %39 {strides = array<i32>} : memref<1x2x256xf32, #tpu.memory_space<vmem>>, vector<1x1x256xf32>,
    %c6 = arith.constant 6 : index
    %40 = memref.load %arg2[%c6] : memref<12xf32, #tpu.memory_space<smem>>
    %41 = vector.broadcast %40 : f32 to vector<1x256xf32>
    %42 = arith.mulf %41, %1 : vector<1x256xf32>
    %c7 = arith.constant 7 : index
    %43 = memref.load %arg2[%c7] : memref<12xf32, #tpu.memory_space<smem>>
    %44 = vector.broadcast %43 : f32 to vector<1x256xf32>
    %45 = arith.mulf %44, %3 : vector<1x256xf32>
    %46 = arith.addf %42, %45 : vector<1x256xf32>
    %c8 = arith.constant 8 : index
    %47 = memref.load %arg2[%c8] : memref<12xf32, #tpu.memory_space<smem>>
    %48 = vector.broadcast %47 : f32 to vector<1x256xf32>
    %49 = arith.mulf %48, %5 : vector<1x256xf32>
    %50 = arith.addf %46, %49 : vector<1x256xf32>
    %c9 = arith.constant 9 : index
    %51 = memref.load %arg2[%c9] : memref<12xf32, #tpu.memory_space<smem>>
    %52 = vector.broadcast %51 : f32 to vector<1x256xf32>
    %53 = arith.mulf %52, %7 : vector<1x256xf32>
    %54 = arith.addf %50, %53 : vector<1x256xf32>
    %c10 = arith.constant 10 : index
    %55 = memref.load %arg2[%c10] : memref<12xf32, #tpu.memory_space<smem>>
    %56 = vector.broadcast %55 : f32 to vector<1x256xf32>
    %57 = arith.mulf %56, %9 : vector<1x256xf32>
    %58 = arith.addf %54, %57 : vector<1x256xf32>
    %c11 = arith.constant 11 : index
    %59 = memref.load %arg2[%c11] : memref<12xf32, #tpu.memory_space<smem>>
    %60 = vector.broadcast %59 : f32 to vector<1x256xf32>
    %61 = arith.addf %58, %60 : vector<1x256xf32>
    %62 = arith.negf %61 : vector<1x256xf32>
    %63 = math.exp %62 : vector<1x256xf32>
    %cst_18 = arith.constant 1.000000e+00 : f32
    %64 = vector.broadcast %cst_18 : f32 to vector<1x256xf32>
    %65 = arith.addf %64, %63 : vector<1x256xf32>
    %66 = arith.divf %64, %65 : vector<1x256xf32>
    %c0_19 = arith.constant 0 : index
    %c1_20 = arith.constant 1 : index
    %c0_21 = arith.constant 0 : index
    %67 = vector.load %arg5[%c0_19, %c1_20, %c0_21] : memref<1x2x256xf32, #tpu.memory_space<vmem>>, vector<1x1x256xf32>
    %68 = vector.shape_cast %67 : vector<1x1x256xf32> to vector<1x256xf32>
    %69 = vector.shape_cast %66 : vector<1x256xf32> to vector<1x1x256xf32>
    tpu.vector_store %arg5[%c0_19, %c1_20, %c0_21], %69 {strides = array<i32>} : memref<1x2x256xf32, #tpu.memory_space<vmem>>, vector<1x1x256xf32>,
    return
  }
  func.func @transform_0(%arg0: i32, %arg1: i32) -> i32 {
    %c0_i32 = arith.constant 0 : i32
    %c0_i32_0 = arith.constant 0 : i32
    return %c0_i32 : i32
  }
  func.func @transform_1(%arg0: i32, %arg1: i32) -> (i32, i32, i32) {
    %c0_i32 = arith.constant 0 : i32
    %c0_i32_0 = arith.constant 0 : i32
    return %arg0, %c0_i32, %arg1 : i32, i32, i32
  }
  func.func @transform_2(%arg0: i32, %arg1: i32) -> (i32, i32, i32) {
    %c0_i32 = arith.constant 0 : i32
    %c0_i32_0 = arith.constant 0 : i32
    return %arg0, %c0_i32, %arg1 : i32, i32, i32
  }
  func.func @transform_3(%arg0: i32, %arg1: i32) -> (i32, i32, i32) {
    %c0_i32 = arith.constant 0 : i32
    %c0_i32_0 = arith.constant 0 : i32
    return %arg0, %c0_i32, %arg1 : i32, i32, i32
  }
}

</mosaic_0001>

<bundles_post_ra>
// kernel: tpu_custom_call.1
= control target key start
LH: loop header
LB: loop body
LE: loop exit
PB: predicated region body
PF: predicated region fallthrough
CT: control target
= control target key end

     0   :  { %8 = vsyncpa [#allocation4], 0  ;;  %s803_s0 = inlined_call_operand.vmem [shape: f32[12], index: 0, kind: input, shape index: {}]   ;;  %s804_s1 = inlined_call_operand.vmem [shape: f32[2,3,256], index: 1, kind: input, shape index: {}]   ;;  %s805_s2 = inlined_call_operand.vmem [shape: f32[2,2,256], index: 2, kind: input, shape index: {}]   ;;  %s806_s3 = inlined_call_operand.hbm [shape: f32[2,2,256], index: 3, kind: output, shape index: {}]  }
   0x1   :  { %9 = vsyncpa [#allocation3], 0 }
   0x2   :  { %11 = vsyncpa [#allocation3 + $0x1], 0  ;;  %s674_s12 = smov 0   ;;  %s676_s13 = smov 0  }
   0x3   :  { %s678_s14 = smov 0   ;;  %s680_s15 = smov 0  }
   0x4   :  { %s682_s16 = smov 0   ;;  %s684_s17 = smov 0  }
   0x5 LB: > { %s444_s18 = sadd.s32 4294967295, %s650_s17   ;;  %s445_s19 = sadd.s32 4294967294, %s650_s17   ;;  %s650_s17 = sphi %s684_s17, %s17_s17   ;;  %s646_s16 = sphi %s682_s16, %s815_s16   ;;  %s642_s15 = sphi %s680_s15, %s814_s15   ;;  %s638_s14 = sphi %s678_s14, %s813_s14   ;;  %s634_s13 = sphi %s676_s13, %s812_s13   ;;  %s630_s12 = sphi %s674_s12, %s811_s12  }
   0x6   : > { %s29_s20 = sadd.s32 1, %s646_s16  ;;  %s115_s21 = sadd.s32 1, %s638_s14 }
   0x7   : > { %p31_p0 = scmp.ge.s32.totalorder %s29_s20, 2  ;;  %p125_p1 = scmp.ne.s32.totalorder %s638_s14, %s634_s13 }
   0x8   : > { %p126_p2 = scmp.eq.s32.totalorder %s444_s18, 1  ;;  %p131_p3 = scmp.ne.s32.totalorder %s634_s13, %s630_s12 }
   0x9   : > { %s817_s20 = smov (%p31_p0, %s29_s20), 0  ;;  %p132_p5 = scmp.eq.s32.totalorder %s445_s19, 1 }
   0xa   : > { %p714_p4 = por %p126_p2, %p125_p1  ;;  %s110_s23 = ssub.s32 %s646_s16, %s817_s20 }
   0xb   : > { %p446_p6 = scmp.ge.s32.totalorder %s650_s17, 1  ;;  %p113_p7 = scmp.eq.s32.totalorder %s110_s23, 0 }
   0xc   : > { %p721_p8 = por %p132_p5, %p131_p3  ;;  %p139_p9 = scmp.lt.s32.totalorder %s650_s17, 3 }
   0xd   : > { %s727_s25 = scalar_select %p113_p7, %s638_s14, %s115_s21  }
   0xe   : > { %p729_p10 = pnand %p446_p6, %p139_p9  ;;  %p733_p11 = scmp.eq.s32.totalorder %s444_s18, 0 }
   0xf   : > { %s152_s30 = sshll.u32 %s803_s0, 4  ;;  %s153_s30 = int_to_ptr.vmem [resolvable:$true] %s152_s30 }
  0x10   : > { %p487_p12 = pneg %p729_p10  ;;  %s555_s4 = scalar_lea.vmem %s153_s30, 16 }
  0x11   : > { %p556_p0 = scmp.ne.s32.totalorder %s153_s30, %s555_s4  ;;  %p563_p5 = scmp.lt.s32.totalorder %s153_s30, %s153_s30 }
  0x12   : > { %p488_p13 = pnand %p733_p11, %p487_p12  ;;  %p564_p6 = scmp.lt.s32.totalorder %s555_s4, %s555_s4 }
  0x14   : > { %p557_p1 = pneg %p488_p13  ;;  %p565_p7 = por %p564_p6, %p563_p5 }
  0x16   : > { %p558_p2 = pnand %p557_p1, %p556_p0 }
  0x18   : > { %p559_p3 = pneg %p558_p2 }
  0x1a   : > { %p566_p9 = pnand %p565_p7, %p559_p3 }
  0x1c   : > { %569 = shalt.err (!%p566_p9)
}
  0x1d   : > { %s652_s5 = smov [#allocation2]   ;;  %191 = sbr.rel (%p729_p10) target bundleno = 111 (0x6f), region = 32 }
  0x1e   : > { %490 = dma.vmem_to_smem (!%p488_p13), %s153_s30, 16, %s652_s5, [#allocation4]  }
  0x22   : > { %621 = dma.done.wait (%p733_p11), [#allocation4], 16  }
  0x23   : > { %623 = vsyncadd (%p733_p11), [#allocation4], 4294967280 }
  0x24   : > { %197 = sfence }
  0x25   : > { %p230_p12 = scmp.lt.s32.totalorder %s642_s15, 1  ;;  %s258_s6 = sld [smem:[#allocation2]]  ;;  %v286_v43 = vlaneseq }
  0x26   : > { %s459_s7 = sld [smem:[#allocation2 + $0x1]] }
  0x27   : > { %s231_s8 = scalar_select %p230_p12, %s642_s15, 1  ;;  %vm288_vm0 = vcmp.lt.s32.totalorder %v286_v43, 256 }
  0x28   : > { %s460_s9 = sld [smem:[#allocation2 + $0x2]] }
  0x29   : > { %s478_s10 = sshll.u32 %s231_s8, 3  ;;  %s479_s21 = sshll.u32 %s231_s8, 2 }
  0x2a   : > { %s237_s19 = scalar_lea.vmem %s804_s1, %s478_s10  ;;  %s461_s23 = sld [smem:[#allocation2 + $0x3]] }
  0x2b   : > { %v250_v0 = vld [vmem:[%s237_s19] ss:$4 sm:$0x3]  ;;  %v456_v1 = vld [vmem:[%s237_s19 + $0x1] ss:$4 sm:$0x3]  ;;  %v259_v2 = vstv %s258_s6  ;;  %s247_s28 = scalar_lea.vmem %s805_s2, %s479_s21 }
  0x2c   : > { %v457_v3 = vld [vmem:[%s237_s19 + $0x2] ss:$4 sm:$0x3]  ;;  %v260_v4 = vmul.f32 %v259_v2, %v250_v0  ;;  %v262_v5 = vstv %s459_s7  ;;  %s462_s29 = sld [smem:[#allocation2 + $0x4]]  ;;  %s226_s10 = sand.u32 1, %s634_s13  }
  0x2d   : > { %v263_v6 = vmul.f32 %v456_v1, %v262_v5  ;;  %s463_s30 = sld [smem:[#allocation2 + $0x5]]  ;;  %v255_v10 = vld [vmem:[%s247_s28] ss:$2 sm:$0x3]  ;;  %s451_s11 = sshll.u32 %s226_s10, 2 }
  0x2e   : > { %v266_v7 = vstv %s460_s9  ;;  %s465_s4 = sld [smem:[#allocation2 + $0x6]]  ;;  %v458_v11 = vld [vmem:[%s247_s28 + $0x1] ss:$2 sm:$0x3]  ;;  %s228_s18 = scalar_lea.vmem [#allocation5], %s451_s11 }
  0x2f   : > { %v264_v8 = vadd.f32 %v263_v6, %v260_v4  ;;  %v267_v9 = vmul.f32 %v457_v3, %v266_v7  ;;  %s466_s5 = sld [smem:[#allocation2 + $0x7]]  ;;  %s338_s19 = sshll.u32 %s228_s18, 4  ;;  %s760_s19 = int_to_ptr.vmem [resolvable:$true] %s338_s19 }
  0x30   : > { %s467_s6 = sld [smem:[#allocation2 + $0x8]]  ;;  %v270_v13 = vstv %s461_s23  ;;  %s480_s21 = sshll.u32 %s642_s15, 6 }
  0x31   : > { %v268_v12 = vadd.f32 %v267_v9, %v264_v8  ;;  %s468_s8 = sld [smem:[#allocation2 + $0x9]]  ;;  %v271_v14 = vmul.f32 %v270_v13, %v255_v10  ;;  %s336_s27 = scalar_lea.hbm %s806_s3, %s480_s21 }
  0x32   : > { %v274_v15 = vstv %s462_s29  ;;  %s469_s7 = sld [smem:[#allocation2 + $0xa]]  ;;  %s322_s28 = scalar_lea.sflag [#allocation3], %s226_s10 }
  0x33   : > { %v275_v16 = vmul.f32 %v458_v11, %v274_v15  ;;  %v272_v17 = vadd.f32 %v271_v14, %v268_v12  ;;  %v278_v19 = vstv %s463_s30  ;;  %s470_s9 = sld [smem:[#allocation2 + $0xb]]  ;;  %s570_s29 = scalar_lea.vmem %s760_s19, 64 }
  0x34   : > { %v292_v18 = vstv %s465_s4  ;;  %p571_p10 = scmp.ne.s32.totalorder %s760_s19, %s570_s29  ;;  %s653_s30 = smov [#allocation5]  }
  0x35   : > { %v293_v20 = vmul.f32 %v292_v18, %v250_v0  ;;  %v295_v21 = vstv %s466_s5  ;;  %v276_v22 = vadd.f32 %v275_v16, %v272_v17  ;;  %s574_s4 = sshll.u32 %s653_s30, 4  ;;  %s575_s4 = int_to_ptr.vmem [resolvable:$false] %s574_s4 }
  0x36   : > { %v296_v23 = vmul.f32 %v456_v1, %v295_v21  ;;  %v299_v24 = vstv %s467_s6  ;;  %p572_p11 = pnand %p571_p10, %p714_p4  ;;  %s576_s15 = scalar_lea.vmem %s575_s4, 128 }
  0x37   : > { %v300_v25 = vmul.f32 %v457_v3, %v299_v24  ;;  %v303_v26 = vstv %s468_s8  ;;  %v279_v27 = vadd.f32 %v278_v19, %v276_v22  ;;  %p577_p0 = scmp.lt.s32.totalorder %s760_s19, %s575_s4  ;;  %p578_p1 = scmp.lt.s32.totalorder %s576_s15, %s570_s29 }
  0x38   : > { %v297_v28 = vadd.f32 %v296_v23, %v293_v20  ;;  %v304_v29 = vmul.f32 %v303_v26, %v255_v10  ;;  %v307_v30 = vstv %s469_s7  ;;  %p573_p13 = pneg %p572_p11 }
  0x39   : > { %v464_v31 = vmul.f32 -1.442695, %v279_v27  ;;  %v308_v33 = vmul.f32 %v458_v11, %v307_v30  ;;  %v311_v35 = vstv %s470_s9  ;;  %p579_p2 = por %p578_p1, %p577_p0 }
  0x3a   : > { %v301_v32 = vadd.f32 %v300_v25, %v297_v28 }
  0x3b   : > { %547 = vpow2.f32 %v464_v31  ;;  %p580_p3 = pnand %p579_p2, %p573_p13 }
  0x3c   : > { %v305_v34 = vadd.f32 %v304_v29, %v301_v32 }
  0x3e   : > { %v309_v36 = vadd.f32 %v308_v33, %v305_v34 }
  0x40   : > { %v312_v37 = vadd.f32 %v311_v35, %v309_v36 }
  0x42   : > { %v471_v38 = vmul.f32 -1.442695, %v312_v37 }
  0x44   : > { %549 = vpow2.f32 %v471_v38 }
  0x48   : > { %v548_v39 = vpop.eup %547 }
  0x49   : > { %v283_v40 = vadd.f32 1.0, %v548_v39 }
  0x4b   : > { %551 = vrcp.f32 %v283_v40 }
  0x51   : > { %v550_v41 = vpop.eup %549 }
  0x52   : > { %v316_v42 = vadd.f32 1.0, %v550_v41 }
  0x54   : > { %553 = vrcp.f32 %v316_v42 }
  0x58   : > { %v552_v44 = vpop.eup %551 }
  0x59   : > { %290 = vst.msk [vmem:[%s228_s18] ss:$2 sm:$0x3] %vm288_vm0, %v552_v44 }
  0x61   : > { %v554_v45 = vpop.eup %553 }
  0x62   : > { %472 = vst.msk [vmem:[%s228_s18 + $0x1] ss:$2 sm:$0x3] %vm288_vm0, %v554_v45 }
  0x63   : > { %583 = shalt.err (!%p580_p3)
}
  0x64   : > { %s584_s5 = scalar_lea.hbm %s336_s27, 64  ;;  %s588_s7 = scalar_lea.hbm %s806_s3, 128 }
  0x65   : > { %p585_p5 = scmp.ne.s32.totalorder %s336_s27, %s584_s5  ;;  %p589_p9 = scmp.lt.s32.totalorder %s336_s27, %s806_s3 }
  0x66   : > { %p590_p12 = scmp.lt.s32.totalorder %s588_s7, %s584_s5 }
  0x67   : > { %p586_p6 = pnand %p585_p5, %p714_p4 }
  0x68   : > { %p591_p10 = por %p590_p12, %p589_p9 }
  0x69   : > { %p587_p7 = pneg %p586_p6 }
  0x6b   : > { %p592_p11 = pnand %p591_p10, %p587_p7 }
  0x6d   : > { %595 = shalt.err (!%p592_p11)
}
  0x6e   : > { %485 = dma.vmem_to_hbm [thread:$0]  (%p714_p4), %s760_s19, 64, %s336_s27, %s322_s28  }
  0x6f PF: > { %p497_p13 = scmp.ge.s32.totalorder %s650_s17, 2  ;;  %s350_s11 = sand.u32 1, %s630_s12  }
  0x70   : > { %s351_s18 = scalar_lea.sflag [#allocation3], %s350_s11 }
  0x71   : > { %p492_p0 = pnand %p497_p13, %p721_p8 }
  0x73   : > { %p493_p1 = pneg %p492_p0 }
  0x75   : > { %625 = dma.done.wait (%p493_p1), %s351_s18, 64  }
  0x76   : > { %627 = vsyncadd (%p493_p1), %s351_s18, 4294967232  ;;  %s17_s17 = sadd.s32 1, %s650_s17   ;;  %s811_s12 = smov %s634_s13 }
  0x77   : > { %p14_p2 = scmp.ge.s32.totalorder %s17_s17, 4   ;;  %s812_s13 = smov %s638_s14 }
  0x78   : > { %s813_s14 = smov %s727_s25  ;;  %s814_s15 = smov %s646_s16 }
  0x79   : > { %s815_s16 = smov %s817_s20  ;;  %16 = sbr.rel (!%p14_p2) target bundleno = 5 (0x5), region = 79 }
  0x7e   :  { %356 = vsyncpa [#allocation3], 1 }
  0x7f   :  { %358 = vsyncpa [#allocation3 + $0x1], 1 }
  0x80   :  { %359 = vsyncpa [#allocation4], 1 }
  0x81   :  { %361 = vsyncpa [#allocation4 + $0x1], 1 }

</bundles_post_ra>
